<compile_context>
chip_gen: v5e
topology: v5e:2x2
jax: 0.10.0
libtpu: 0.0.40
codegen_flags: <defaults>
</compile_context>

<pallas_src>
import jax
import jax.numpy as jnp
from jax.experimental import pallas as pl
from jax.experimental.pallas import tpu as pltpu


def mdn_kernel(x_ref, w1_ref, b1_ref, w2_ref, b2_ref, wpi_ref, bpi_ref,
               pi_ref, feat_ref):
    """One batch tile: x_ref (tb, C, HW) f32 -> pi_ref (tb, K) f32."""
    tb = x_ref.shape[0]
    inv_hw = 1.0 / x_ref.shape[-1]

    # Statically unrolled loop over the tb batch elements of this block.
    # Per element: two 2-D MXU matmuls (bf16 in, f32 accumulate) + bias/ReLU on
    # the VPU + a lane (XLU) reduction for the global average pool.
    for t in range(tb):
        xt = x_ref[t].astype(jnp.bfloat16)                      # (C, HW) VPU cast
        h1 = jnp.dot(w1_ref[...], xt,
                     preferred_element_type=jnp.float32)         # (Hd, HW)
        h1 = jnp.maximum(h1 + b1_ref[...], 0.0)
        h2 = jnp.dot(w2_ref[...], h1.astype(jnp.bfloat16),
                     preferred_element_type=jnp.float32)         # (Hd, HW)
        h2 = jnp.maximum(h2 + b2_ref[...], 0.0)
        feat_ref[t, :] = jnp.sum(h2, axis=-1) * inv_hw           # (Hd,) mean pool

    # MDN pi head: linear -> softmax over the K mixture components (all f32).
    logits = jnp.dot(feat_ref[...], wpi_ref[...],
                     preferred_element_type=jnp.float32) + bpi_ref[...]   # (tb, K)
    m = jnp.max(logits, axis=-1, keepdims=True)
    e = jnp.exp(logits - m)
    # Exact division (NOT the approx EUP reciprocal) so each row sums to 1 to
    # f32 precision; only (tb, 1) values so it is off the critical path.
    pi_ref[...] = (e / jnp.sum(e, axis=-1, keepdims=True)).astype(pi_ref.dtype)


_VMEM_LIMIT = 48 * 1024 * 1024   # <= v7x's 64 MiB physical VMEM; fine on v5e/v6e.


def _pick_batch_tile(B, C, HW, vmem_budget_bytes, max_unroll=16):
    """Largest divisor of B that
       (a) leaves >= 2 grid steps when B >= 2 (v7x: both TensorCores busy),
       (b) keeps the double-buffered f32 x tile within ~half the VMEM budget,
       (c) bounds the in-kernel static unroll."""
    x_elem_bytes = C * HW * 4
    max_by_vmem = max(1, (vmem_budget_bytes // 2) // (2 * x_elem_bytes))
    cap = max(1, min(B // 2 if B >= 2 else 1, max_by_vmem, max_unroll))
    return max(d for d in range(1, cap + 1) if B % d == 0)


def _base_mdn_forward(x_nchw, params):
    """x_nchw: [B, C, H, W] float32. Returns pi: [B, K]."""
    B, C, H, W = x_nchw.shape
    HW = H * W
    w1, b1, w2, b2, wpi, bpi = params          # PyTorch-style (in, out) / (1, out)
    Hd = w1.shape[1]
    K = wpi.shape[1]

    tb = _pick_batch_tile(B, C, HW, _VMEM_LIMIT)
    n_blocks = B // tb

    # Free reshape of NCHW; kept in f32 -- the bf16 cast happens in-kernel.
    x_cf = x_nchw.reshape(B, C, HW)

    # Tiny per-call weight preps; under jit they constant-fold / fuse away.
    w1t = w1.T.astype(jnp.bfloat16)            # (Hd, C)
    w2t = w2.T.astype(jnp.bfloat16)            # (Hd, Hd)
    b1c = b1.reshape(Hd, 1).astype(jnp.float32)
    b2c = b2.reshape(Hd, 1).astype(jnp.float32)
    wpi_f = wpi.astype(jnp.float32)            # (Hd, K)
    bpi_r = bpi.reshape(1, K).astype(jnp.float32)

    pi_blocks = pl.pallas_call(
        mdn_kernel,
        out_shape=jax.ShapeDtypeStruct((n_blocks, tb, K), jnp.float32),
        grid=(n_blocks,),
        in_specs=[
            pl.BlockSpec((tb, C, HW), lambda b: (b, 0, 0)),   # x (per-step batch tile, f32)
            pl.BlockSpec((Hd, C), lambda b: (0, 0)),          # w1^T (bf16)
            pl.BlockSpec((Hd, 1), lambda b: (0, 0)),          # b1
            pl.BlockSpec((Hd, Hd), lambda b: (0, 0)),         # w2^T (bf16)
            pl.BlockSpec((Hd, 1), lambda b: (0, 0)),          # b2
            pl.BlockSpec((Hd, K), lambda b: (0, 0)),          # wpi
            pl.BlockSpec((1, K), lambda b: (0, 0)),           # bpi
        ],
        out_specs=pl.BlockSpec((None, tb, K), lambda b: (b, 0, 0)),
        scratch_shapes=[pltpu.VMEM((tb, Hd), jnp.float32)],   # pooled features
        compiler_params=pltpu.CompilerParams(
            dimension_semantics=("parallel",),                # megacore-shardable batch axis
            vmem_limit_bytes=_VMEM_LIMIT,
        ),
    )(x_cf, w1t, b1c, w2t, b2c, wpi_f, bpi_r)

    return pi_blocks.reshape(B, K)


base_mdn_forward = jax.jit(_base_mdn_forward)


def init_params(key, C, Hd, K):
    """Deterministic PyTorch-Linear-style init (uniform +-1/sqrt(fan_in))."""
    ks = jax.random.split(key, 6)

    def lin(kw, kb, fan_in, fan_out):
        lim = 1.0 / jnp.sqrt(jnp.array(fan_in, jnp.float32))
        w = jax.random.uniform(kw, (fan_in, fan_out), jnp.float32, -lim, lim)
        b = jax.random.uniform(kb, (1, fan_out), jnp.float32, -lim, lim)
        return w, b

    w1, b1 = lin(ks[0], ks[1], C, Hd)
    w2, b2 = lin(ks[2], ks[3], Hd, Hd)
    wpi, bpi = lin(ks[4], ks[5], Hd, K)
    return (w1, b1, w2, b2, wpi, bpi)


def base_mdn_forward_ref(x_nchw, params):
    """Pure-JAX f32 reference for correctness checking."""
    B, C, H, W = x_nchw.shape
    w1, b1, w2, b2, wpi, bpi = params
    x = jnp.transpose(x_nchw, (0, 2, 3, 1)).reshape(B, H * W, C)
    h1 = jnp.maximum(x @ w1 + b1, 0.0)
    h2 = jnp.maximum(h1 @ w2 + b2, 0.0)
    feat = jnp.mean(h2, axis=1)
    logits = feat @ wpi + bpi
    return jax.nn.softmax(logits, axis=-1)


if __name__ == "__main__":
    B, C, H, W = 2, 4, 16, 16
    Hd, K = 32, 8

    key = jax.random.PRNGKey(0)
    kx, kp = jax.random.split(key)
    x = jax.random.normal(kx, (B, C, H, W), jnp.float32)
    params = init_params(kp, C, Hd, K)

    pi = base_mdn_forward(x, params)
    pi = jax.block_until_ready(pi)

    pi_ref = base_mdn_forward_ref(x, params)
    assert pi.shape == (B, K)
    # Softmax rows sum to 1 exactly up to f32 rounding (exact division).
    assert bool(jnp.allclose(jnp.sum(pi, axis=-1), 1.0, atol=1e-3))
    # bf16 MXU inputs -> small deviation from the pure-f32 reference.
    assert bool(jnp.allclose(pi, pi_ref, atol=3e-3, rtol=3e-3))

    print("KERNEL_OK")
</pallas_src>

<mosaic_0001>
module attributes {stable_mosaic.version = 11 : i64} {
  func.func @mdn_kernel(%arg0: i32, %arg1: memref<1x4x256xf32, #tpu.memory_space<vmem>>, %arg2: memref<32x4xbf16, #tpu.memory_space<vmem>>, %arg3: memref<32x1xf32, #tpu.memory_space<vmem>>, %arg4: memref<32x32xbf16, #tpu.memory_space<vmem>>, %arg5: memref<32x1xf32, #tpu.memory_space<vmem>>, %arg6: memref<32x8xf32, #tpu.memory_space<vmem>>, %arg7: memref<1x8xf32, #tpu.memory_space<vmem>>, %arg8: memref<1x1x8xf32, #tpu.memory_space<vmem>>, %arg9: memref<1x32xf32, #tpu.memory_space<vmem>>) attributes {dimension_semantics = [#tpu.dimension_semantics<parallel>], iteration_bounds = array<i64: 2>, scalar_prefetch = 0 : i64, scratch_operands = 1 : i64, tpu.core_type = #tpu.core_type<tc>, window_params = [{transform_indices = @transform_0, window_bounds = array<i64: 1, 4, 256>}, {pipeline_mode = #tpu.pipeline_mode<synchronous>, transform_indices = @transform_1, window_bounds = array<i64: 32, 4>}, {pipeline_mode = #tpu.pipeline_mode<synchronous>, transform_indices = @transform_2, window_bounds = array<i64: 32, 1>}, {pipeline_mode = #tpu.pipeline_mode<synchronous>, transform_indices = @transform_3, window_bounds = array<i64: 32, 32>}, {pipeline_mode = #tpu.pipeline_mode<synchronous>, transform_indices = @transform_4, window_bounds = array<i64: 32, 1>}, {pipeline_mode = #tpu.pipeline_mode<synchronous>, transform_indices = @transform_5, window_bounds = array<i64: 32, 8>}, {pipeline_mode = #tpu.pipeline_mode<synchronous>, transform_indices = @transform_6, window_bounds = array<i64: 1, 8>}, {transform_indices = @transform_7, window_bounds = array<i64: 1, 1, 8>}]} {
    %c0 = arith.constant 0 : index
    %c0_0 = arith.constant 0 : index
    %c0_1 = arith.constant 0 : index
    %0 = vector.load %arg1[%c0, %c0_0, %c0_1] : memref<1x4x256xf32, #tpu.memory_space<vmem>>, vector<1x4x256xf32>
    %1 = vector.shape_cast %0 : vector<1x4x256xf32> to vector<4x256xf32>
    %2 = arith.truncf %1 : vector<4x256xf32> to vector<4x256xbf16>
    %c0_2 = arith.constant 0 : index
    %c0_3 = arith.constant 0 : index
    %3 = vector.load %arg2[%c0_2, %c0_3] : memref<32x4xbf16, #tpu.memory_space<vmem>>, vector<32x4xbf16>
    %cst = arith.constant dense<0.000000e+00> : vector<32x256xf32>
    %4 = tpu.matmul %3, %2, %cst {dimension_numbers = #tpu.dot_dimension_numbers<[1], [0], [0], [1], [0, 0, 1, 1], [], []>} : vector<32x4xbf16>, vector<4x256xbf16>, vector<32x256xf32> -> vector<32x256xf32>
    %c0_4 = arith.constant 0 : index
    %c0_5 = arith.constant 0 : index
    %5 = vector.load %arg3[%c0_4, %c0_5] : memref<32x1xf32, #tpu.memory_space<vmem>>, vector<32x1xf32>
    %6 = vector.broadcast %5 : vector<32x1xf32> to vector<32x256xf32>
    %7 = arith.addf %4, %6 : vector<32x256xf32>
    %cst_6 = arith.constant 0.000000e+00 : f32
    %8 = vector.broadcast %cst_6 : f32 to vector<32x256xf32>
    %9 = arith.maximumf %7, %8 : vector<32x256xf32>
    %c0_7 = arith.constant 0 : index
    %c0_8 = arith.constant 0 : index
    %10 = vector.load %arg4[%c0_7, %c0_8] : memref<32x32xbf16, #tpu.memory_space<vmem>>, vector<32x32xbf16>
    %11 = arith.truncf %9 : vector<32x256xf32> to vector<32x256xbf16>
    %cst_9 = arith.constant dense<0.000000e+00> : vector<32x256xf32>
    %12 = tpu.matmul %10, %11, %cst_9 {dimension_numbers = #tpu.dot_dimension_numbers<[1], [0], [0], [1], [0, 0, 1, 1], [], []>} : vector<32x32xbf16>, vector<32x256xbf16>, vector<32x256xf32> -> vector<32x256xf32>
    %c0_10 = arith.constant 0 : index
    %c0_11 = arith.constant 0 : index
    %13 = vector.load %arg5[%c0_10, %c0_11] : memref<32x1xf32, #tpu.memory_space<vmem>>, vector<32x1xf32>
    %14 = vector.broadcast %13 : vector<32x1xf32> to vector<32x256xf32>
    %15 = arith.addf %12, %14 : vector<32x256xf32>
    %cst_12 = arith.constant 0.000000e+00 : f32
    %16 = vector.broadcast %cst_12 : f32 to vector<32x256xf32>
    %17 = arith.maximumf %15, %16 : vector<32x256xf32>
    %cst_13 = arith.constant dense<0.000000e+00> : vector<32xf32>
    %18 = vector.multi_reduction <add>, %17, %cst_13 [1] : vector<32x256xf32> to vector<32xf32>
    %cst_14 = arith.constant 3.906250e-03 : f32
    %19 = vector.broadcast %cst_14 : f32 to vector<32xf32>
    %20 = arith.mulf %18, %19 : vector<32xf32>
    %c0_15 = arith.constant 0 : index
    %c0_16 = arith.constant 0 : index
    %21 = vector.load %arg9[%c0_15, %c0_16] : memref<1x32xf32, #tpu.memory_space<vmem>>, vector<1x32xf32>
    %22 = vector.shape_cast %21 : vector<1x32xf32> to vector<32xf32>
    %23 = vector.shape_cast %20 : vector<32xf32> to vector<1x32xf32>
    tpu.vector_store %arg9[%c0_15, %c0_16], %23 {strides = array<i32>} : memref<1x32xf32, #tpu.memory_space<vmem>>, vector<1x32xf32>,
    %c0_17 = arith.constant 0 : index
    %c0_18 = arith.constant 0 : index
    %24 = vector.load %arg9[%c0_17, %c0_18] : memref<1x32xf32, #tpu.memory_space<vmem>>, vector<1x32xf32>
    %c0_19 = arith.constant 0 : index
    %c0_20 = arith.constant 0 : index
    %25 = vector.load %arg6[%c0_19, %c0_20] : memref<32x8xf32, #tpu.memory_space<vmem>>, vector<32x8xf32>
    %cst_21 = arith.constant dense<0.000000e+00> : vector<1x8xf32>
    %26 = tpu.matmul %24, %25, %cst_21 {dimension_numbers = #tpu.dot_dimension_numbers<[1], [0], [0], [1], [0, 0, 1, 1], [], []>} : vector<1x32xf32>, vector<32x8xf32>, vector<1x8xf32> -> vector<1x8xf32>
    %c0_22 = arith.constant 0 : index
    %c0_23 = arith.constant 0 : index
    %27 = vector.load %arg7[%c0_22, %c0_23] : memref<1x8xf32, #tpu.memory_space<vmem>>, vector<1x8xf32>
    %28 = arith.addf %26, %27 : vector<1x8xf32>
    %cst_24 = arith.constant dense<0xFF800000> : vector<1xf32>
    %29 = vector.multi_reduction <maximumf>, %28, %cst_24 [1] : vector<1x8xf32> to vector<1xf32>
    %30 = vector.shape_cast %29 : vector<1xf32> to vector<1x1xf32>
    %31 = vector.broadcast %30 : vector<1x1xf32> to vector<1x8xf32>
    %32 = arith.subf %28, %31 : vector<1x8xf32>
    %33 = math.exp %32 : vector<1x8xf32>
    %cst_25 = arith.constant dense<0.000000e+00> : vector<1xf32>
    %34 = vector.multi_reduction <add>, %33, %cst_25 [1] : vector<1x8xf32> to vector<1xf32>
    %35 = vector.shape_cast %34 : vector<1xf32> to vector<1x1xf32>
    %36 = vector.broadcast %35 : vector<1x1xf32> to vector<1x8xf32>
    %37 = arith.divf %33, %36 : vector<1x8xf32>
    %c0_26 = arith.constant 0 : index
    %c0_27 = arith.constant 0 : index
    %c0_28 = arith.constant 0 : index
    %38 = vector.load %arg8[%c0_26, %c0_27, %c0_28] : memref<1x1x8xf32, #tpu.memory_space<vmem>>, vector<1x1x8xf32>
    %39 = vector.shape_cast %38 : vector<1x1x8xf32> to vector<1x8xf32>
    %40 = vector.shape_cast %37 : vector<1x8xf32> to vector<1x1x8xf32>
    tpu.vector_store %arg8[%c0_26, %c0_27, %c0_28], %40 {strides = array<i32>} : memref<1x1x8xf32, #tpu.memory_space<vmem>>, vector<1x1x8xf32>,
    return
  }
  func.func @transform_0(%arg0: i32) -> (i32, i32, i32) {
    %c0_i32 = arith.constant 0 : i32
    %c0_i32_0 = arith.constant 0 : i32
    %c0_i32_1 = arith.constant 0 : i32
    return %arg0, %c0_i32, %c0_i32_0 : i32, i32, i32
  }
  func.func @transform_1(%arg0: i32) -> (i32, i32) {
    %c0_i32 = arith.constant 0 : i32
    %c0_i32_0 = arith.constant 0 : i32
    %c0_i32_1 = arith.constant 0 : i32
    return %c0_i32, %c0_i32_0 : i32, i32
  }
  func.func @transform_2(%arg0: i32) -> (i32, i32) {
    %c0_i32 = arith.constant 0 : i32
    %c0_i32_0 = arith.constant 0 : i32
    %c0_i32_1 = arith.constant 0 : i32
    return %c0_i32, %c0_i32_0 : i32, i32
  }
  func.func @transform_3(%arg0: i32) -> (i32, i32) {
    %c0_i32 = arith.constant 0 : i32
    %c0_i32_0 = arith.constant 0 : i32
    %c0_i32_1 = arith.constant 0 : i32
    return %c0_i32, %c0_i32_0 : i32, i32
  }
  func.func @transform_4(%arg0: i32) -> (i32, i32) {
    %c0_i32 = arith.constant 0 : i32
    %c0_i32_0 = arith.constant 0 : i32
    %c0_i32_1 = arith.constant 0 : i32
    return %c0_i32, %c0_i32_0 : i32, i32
  }
  func.func @transform_5(%arg0: i32) -> (i32, i32) {
    %c0_i32 = arith.constant 0 : i32
    %c0_i32_0 = arith.constant 0 : i32
    %c0_i32_1 = arith.constant 0 : i32
    return %c0_i32, %c0_i32_0 : i32, i32
  }
  func.func @transform_6(%arg0: i32) -> (i32, i32) {
    %c0_i32 = arith.constant 0 : i32
    %c0_i32_0 = arith.constant 0 : i32
    %c0_i32_1 = arith.constant 0 : i32
    return %c0_i32, %c0_i32_0 : i32, i32
  }
  func.func @transform_7(%arg0: i32) -> (i32, i32, i32) {
    %c0_i32 = arith.constant 0 : i32
    %c0_i32_0 = arith.constant 0 : i32
    %c0_i32_1 = arith.constant 0 : i32
    return %arg0, %c0_i32, %c0_i32_0 : i32, i32, i32
  }
}

</mosaic_0001>

<bundles_post_ra>
// kernel: _base_mdn_forward.1
= control target key start
LH: loop header
LB: loop body
LE: loop exit
PB: predicated region body
PF: predicated region fallthrough
CT: control target
= control target key end

     0   :  { %12 = vsyncpa [#allocation4], 0  ;;  %s974_s0 = inlined_call_operand.vmem [shape: f32[2,4,256], index: 0, kind: input, shape index: {}]   ;;  %s975_s1 = inlined_call_operand.vmem [shape: bf16[32,4], index: 1, kind: input, shape index: {}]   ;;  %s976_s2 = inlined_call_operand.vmem [shape: f32[32,1], index: 2, kind: input, shape index: {}]   ;;  %s977_s3 = inlined_call_operand.vmem [shape: bf16[32,32], index: 3, kind: input, shape index: {}]   ;;  %s978_s4 = inlined_call_operand.vmem [shape: f32[32,1], index: 4, kind: input, shape index: {}]   ;;  %s979_s5 = inlined_call_operand.vmem [shape: f32[32,8], index: 5, kind: input, shape index: {}]   ;;  %s980_s6 = inlined_call_operand.vmem [shape: f32[1,8], index: 6, kind: input, shape index: {}]   ;;  %s981_s7 = inlined_call_operand.hbm [shape: f32[2,1,8], index: 7, kind: output, shape index: {}]  }
   0x1   :  { %14 = vsyncpa [#allocation4 + $0x1], 0  ;;  %s830_s24 = smov 0   ;;  %s832_s25 = smov 0  }
   0x2   :  { %s834_s26 = smov 0   ;;  %s836_s27 = smov 0  }
   0x3 LB: > { %s851_s28 = sadd.s32 4294967295, %s787_s27   ;;  %s640_s29 = sadd.s32 4294967294, %s787_s27   ;;  %s787_s27 = sphi %s836_s27, %s987_s27   ;;  %s783_s26 = sphi %s834_s26, %s986_s26   ;;  %s779_s25 = sphi %s832_s25, %s985_s25   ;;  %s775_s24 = sphi %s830_s24, %s984_s24  }
   0x4   : > { %s855_s30 = sadd.s32 1, %s787_s27   ;;  %s179_s8 = sadd.s32 1, %s783_s26 }
   0x5   : > { %s176_s9 = ssub.s32 %s787_s27, %s855_s30  ;;  %p189_p0 = scmp.ne.s32.totalorder %s783_s26, %s779_s25 }
   0x6   : > { %p177_p1 = scmp.eq.s32.totalorder %s176_s9, 0  ;;  %p190_p2 = scmp.eq.s32.totalorder %s851_s28, 1 }
   0x7   : > { %p195_p3 = scmp.ne.s32.totalorder %s779_s25, %s775_s24  ;;  %p196_p4 = scmp.eq.s32.totalorder %s640_s29, 1 }
   0x8   : > { %s866_s10 = scalar_select %p177_p1, %s783_s26, %s179_s8  }
   0x9   : > { %p868_p5 = por %p190_p2, %p189_p0  ;;  %p872_p6 = por %p196_p4, %p195_p3 }
   0xa   : > { %p643_p7 = scmp.ge.s32.totalorder %s787_s27, 1  ;;  %p240_p8 = scmp.lt.s32.totalorder %s787_s27, 3 }
   0xc   : > { %p241_p9 = pnand %p643_p7, %p240_p8 }
   0xd   : > { %p271_p10 = scmp.lt.s32.totalorder (!%p241_p9), %s851_s28, 1  ;;  %s269_s29 = sand.u32 (!%p241_p9), 1, %s779_s25  }
   0xe   : > { %244 = sbr.rel (%p241_p9) target bundleno = 887 (0x377), region = 48  ;;  %s581_s13 = scalar_lea.hbm (!%p241_p9), %s981_s7, %s851_s28 }
   0xf   : > { %s270_s14 = scalar_lea.vmem (!%p241_p9), [#allocation3], %s269_s29  ;;  %s585_s16 = sshll.u32 (!%p241_p9), %s581_s13, 4  ;;  %s586_s16 = int_to_ptr.hbm [resolvable:$true] %s585_s16 }
  0x10   : > { %s583_s15 = sshll.u32 (!%p241_p9), %s270_s14, 4  ;;  %s584_s15 = int_to_ptr.vmem [resolvable:$true] %s583_s15 }
  0x13   : > { %v292_v0 = vld [vmem:[%s976_s2 + $0x10] sm:$0xff]  ;;  %v789_v1 = vmov 0   ;;  %v290_v2 = vld [vmem:[%s976_s2] sm:$0xff]  ;;  %s272_s17 = scalar_select %p271_p10, %s851_s28, 1  ;;  %v293_v4 = vld [vmem:[%s976_s2 + $0x18] sm:$0xff]  ;;  %vm331_vm0 = vcmask 1041408  }
  0x14   : > { %719 = vset.pattern.permute.xlu1 %v789_v1  ;;  %718 = vset.pattern.permute.xlu0 %v789_v1  ;;  %v291_v5 = vld [vmem:[%s976_s2 + $0x8] sm:$0xff]  ;;  %v394_v10 = vld [vmem:[%s978_s4 + $0x10] sm:$0xff]  ;;  %v395_v11 = vld [vmem:[%s978_s4 + $0x18] sm:$0xff]  ;;  %vm324_vm1 = vcmask 31744   ;;  %vm426_vm2 = vcmask 261120   ;;  %vm504_vm3 = vcmask 130112  }
  0x15   : > { %306 = vperm.xlu0 %718, %v292_v0   ;;  %296 = vperm.xlu1 %719, %v290_v2   ;;  %s673_s18 = sshll.u32 %s272_s17, 3  ;;  %v674_v14 = vld [vmem:[%s975_s1] sm:$0xff]  ;;  %v675_v15 = vld [vmem:[%s975_s1 + $0x8] sm:$0xff]  ;;  %vm508_vm4 = vcmask 195712   ;;  %vm512_vm5 = vcmask 261312   ;;  %vm515_vm6 = vcmask 253952  }
  0x16   : > { %720 = vset.pattern.permute.xlu2 %v789_v1  ;;  %s275_s21 = scalar_lea.vmem %s974_s0, %s673_s18  ;;  %v392_v25 = vld [vmem:[%s978_s4] sm:$0xff]  ;;  %v393_v45 = vld [vmem:[%s978_s4 + $0x8] sm:$0xff]  ;;  %vm546_vm7 = vcmask 57344   ;;  %s573_s17 = scalar_lea.sflag [#allocation4], %s269_s29 }
  0x17   : > { %v277_v3 = vld [vmem:[%s275_s21] sm:$0xff]  ;;  %398 = vperm.xlu2 %720, %v392_v25   ;;  %v677_v51 = vld [vmem:[%s977_s3 + $0x8] sm:$0xff]  ;;  %s739_s18 = sshra.s32 %s586_s16, 4  ;;  %s745_s21 = scalar_lea.hbm %s981_s7, 2  ;;  %s740_s18 = int_to_ptr.hbm [resolvable:$true] %s739_s18 }
  0x18   : > { %279 = vst [vmem:[#allocation1] ss:$2 sm:$0xff] %v277_v3  ;;  %v676_v50 = vld [vmem:[%s977_s3] sm:$0xff]  ;;  %s741_s28 = scalar_lea.hbm %s740_s18, 1  ;;  %p746_p0 = scmp.lt.s32.totalorder %s740_s18, %s981_s7 }
  0x19   : > { %p742_p11 = scmp.ne.s32.totalorder %s740_s18, %s741_s28  ;;  %p747_p1 = scmp.lt.s32.totalorder %s745_s21, %s741_s28 }
  0x1b   : > { %p743_p12 = pnand %p742_p11, %p868_p5  ;;  %p748_p2 = por %p747_p1, %p746_p0 }
  0x1d   : > { %311 = vperm.xlu0 %718, %v293_v4   ;;  %301 = vperm.xlu1 %719, %v291_v5   ;;  %p744_p13 = pneg %p743_p12 }
  0x1f   : > { %v280_v6 = vld.sshfl [vmem:[#allocation1] sm:$0xff pattern:$0x75316420]  ;;  %v281_v7 = vld.sshfl [vmem:[#allocation1 + $0x8] sm:$0xff pattern:$0x75316420]  ;;  %403 = vperm.xlu2 %720, %v393_v45   ;;  %p749_p3 = pnand %p748_p2, %p744_p13 }
  0x20   : > { %v284_v8 = vpack.c.bf16 %v280_v6, %v280_v6  ;;  %v285_v9 = vpack.c.bf16 %v281_v7, %v281_v7  ;;  %v522_v45 = vld [vmem:[%s980_s6] sm:$0x1] }
  0x22   : > { %v333_v12 = vsel %vm331_vm0, %v284_v8, 0  ;;  %v336_v13 = vsel %vm331_vm0, %v285_v9, 0 }
  0x23   : > { %345 = vmatpush.bf16.msra.mxu0 %v333_v12  ;;  %364 = vmatpush.bf16.msra.mxu1 %v336_v13 }
  0x25   : > { %408 = vperm.xlu0 %718, %v394_v10   ;;  %413 = vperm.xlu1 %719, %v395_v11  }
  0x26   : > { %654 = vmatmul.msk.bf16.vlgmr.msra.gmra.mxu0 %vm324_vm1, %v674_v14  ;;  %656 = vmatmul.msk.bf16.vlgmr.msra.gmra.mxu1 %vm324_vm1, %v674_v14 }
  0x36   : > { %655 = vmatmul.msk.bf16.gmra.mxu0 %vm324_vm1, %v675_v15  ;;  %657 = vmatmul.msk.bf16.gmra.mxu1 %vm324_vm1, %v675_v15 }
  0x71   : > { %v399_v52 = vpop.permute.xlu2 %398 }
  0x79   : > { %v404_v60 = vpop.permute.xlu2 %403 }
  0x87   : > { %v297_v20 = vpop.permute.xlu1 %296  ;;  %v307_v21 = vpop.permute.xlu0 %306 }
  0x8f   : > { %v302_v24 = vpop.permute.xlu1 %301  ;;  %v312_v26 = vpop.permute.xlu0 %311 }
  0x97   : > { %v409_v4 = vpop.permute.xlu0 %408  ;;  %v414_v12 = vpop.permute.xlu1 %413 }
  0xa3   : > { %v347_v16 = vpop.f32.mrf.mxu0  ;;  %v366_v17 = vpop.f32.mrf.mxu1 }
  0xa4   : > { %v348_v35 = vadd.f32 %v347_v16, %v297_v20  ;;  %v367_v36 = vadd.f32 %v366_v17, %v297_v20  ;;  %v521_v20 = vld [vmem:[%s979_s5 + $0x18] sm:$0xff] }
  0xa5   : > { %538 = vmatpush.msrb.mxu0 %v521_v20 }
  0xa6   : > { %v376_v46 = vmax.f32 %v348_v35, 0.0  ;;  %v377_v47 = vmax.f32 %v367_v36, 0.0 }
  0xab   : > { %v349_v18 = vpop.f32.mrf.mxu0  ;;  %v368_v19 = vpop.f32.mrf.mxu1 }
  0xac   : > { %v350_v31 = vadd.f32 %v349_v18, %v302_v24  ;;  %v369_v32 = vadd.f32 %v368_v19, %v302_v24  ;;  %v499_v24 = vlaneseq }
  0xae   : > { %v378_v41 = vmax.f32 %v350_v31, 0.0  ;;  %v379_v42 = vmax.f32 %v369_v32, 0.0 }
  0xb0   : > { %v388_v48 = vpack.c.bf16 %v378_v41, %v376_v46  ;;  %v389_v49 = vpack.c.bf16 %v379_v42, %v377_v47 }
  0xb3   : > { %v352_v22 = vpop.f32.mrf.mxu0  ;;  %v371_v23 = vpop.f32.mrf.mxu1 }
  0xb4   : > { %v353_v27 = vadd.f32 %v352_v22, %v307_v21  ;;  %v372_v28 = vadd.f32 %v371_v23, %v307_v21  ;;  %v520_v21 = vld [vmem:[%s979_s5 + $0x10] sm:$0xff]  ;;  %v519_v22 = vld [vmem:[%s979_s5 + $0x8] sm:$0xff]  ;;  %v518_v23 = vld [vmem:[%s979_s5] sm:$0xff] }
  0xb5   : > { %539 = vmatpush.msrb.mxu0 %v520_v21 }
  0xb6   : > { %v380_v37 = vmax.f32 %v353_v27, 0.0  ;;  %v381_v38 = vmax.f32 %v372_v28, 0.0  ;;  %v500_v27 = vand.u32 127, %v499_v24 }
  0xb7   : > { %540 = vmatpush.msrb.mxu0 %v519_v22 }
  0xb8   : > { %v506_v31 = vadd.s32 4294967280, %v500_v27  ;;  %v510_v35 = vadd.s32 4294967272, %v500_v27 }
  0xb9   : > { %541 = vmatpush.msrb.mxu0 %v518_v23 }
  0xbb   : > { %v354_v29 = vpop.f32.mrf.mxu0  ;;  %v373_v30 = vpop.f32.mrf.mxu1 }
  0xbc   : > { %v355_v33 = vadd.f32 %v354_v29, %v312_v26  ;;  %v374_v34 = vadd.f32 %v373_v30, %v312_v26  ;;  %v502_v29 = vadd.s32 4294967288, %v500_v27 }
  0xbe   : > { %v382_v39 = vmax.f32 %v355_v33, 0.0  ;;  %v383_v40 = vmax.f32 %v374_v34, 0.0 }
  0xc0   : > { %v390_v43 = vpack.c.bf16 %v382_v39, %v380_v37  ;;  %v391_v44 = vpack.c.bf16 %v383_v40, %v381_v38 }
  0xc2   : > { %439 = vmatpush.bf16.msra.mxu2 %v390_v43  ;;  %458 = vmatpush.bf16.msra.mxu3 %v391_v44 }
  0xc6   : > { %440 = vmatpush.bf16.msra.mxu2 %v388_v48  ;;  %459 = vmatpush.bf16.msra.mxu3 %v389_v49 }
  0xc9   : > { %666 = vmatmul.msk.bf16.vlgmr.msra.gmra.mxu2 %vm426_vm2, %v676_v50  ;;  %668 = vmatmul.msk.bf16.vlgmr.msra.gmra.mxu3 %vm426_vm2, %v676_v50 }
  0xd9   : > { %667 = vmatmul.msk.bf16.gmra.mxu2 %vm426_vm2, %v677_v51  ;;  %669 = vmatmul.msk.bf16.gmra.mxu3 %vm426_vm2, %v677_v51 }
 0x14c   : > { %v442_v53 = vpop.f32.mrf.mxu2  ;;  %v461_v54 = vpop.f32.mrf.mxu3 }
 0x14d   : > { %v443_v55 = vadd.f32 %v442_v53, %v399_v52  ;;  %v462_v56 = vadd.f32 %v461_v54, %v399_v52 }
 0x14f   : > { %v471_v57 = vmax.f32 %v443_v55, 0.0  ;;  %v472_v58 = vmax.f32 %v462_v56, 0.0 }
 0x151   : > { %v479_v59 = vadd.f32 %v472_v58, %v471_v57 }
 0x153   : > { %480 = vadd.xlane.f32.xlu2 %v479_v59 }
 0x154   : > { %v444_v61 = vpop.f32.mrf.mxu2  ;;  %v463_v62 = vpop.f32.mrf.mxu3 }
 0x155   : > { %v445_v63 = vadd.f32 %v444_v61, %v404_v60  ;;  %v464_v0 = vadd.f32 %v463_v62, %v404_v60 }
 0x157   : > { %v473_v1 = vmax.f32 %v445_v63, 0.0  ;;  %v474_v2 = vmax.f32 %v464_v0, 0.0 }
 0x159   : > { %v482_v3 = vadd.f32 %v474_v2, %v473_v1 }
 0x15b   : > { %483 = vadd.xlane.f32.xlu0 %v482_v3 }
 0x15c   : > { %v447_v5 = vpop.f32.mrf.mxu2  ;;  %v466_v6 = vpop.f32.mrf.mxu3 }
 0x15d   : > { %v448_v7 = vadd.f32 %v447_v5, %v409_v4  ;;  %v467_v8 = vadd.f32 %v466_v6, %v409_v4 }
 0x15f   : > { %v475_v9 = vmax.f32 %v448_v7, 0.0  ;;  %v476_v10 = vmax.f32 %v467_v8, 0.0 }
 0x161   : > { %v485_v11 = vadd.f32 %v476_v10, %v475_v9 }
 0x163   : > { %486 = vadd.xlane.f32.xlu1 %v485_v11 }
 0x164   : > { %v449_v13 = vpop.f32.mrf.mxu2  ;;  %v468_v14 = vpop.f32.mrf.mxu3 }
 0x165   : > { %v450_v15 = vadd.f32 %v449_v13, %v414_v12  ;;  %v469_v16 = vadd.f32 %v468_v14, %v414_v12 }
 0x167   : > { %v477_v17 = vmax.f32 %v450_v15, 0.0  ;;  %v478_v18 = vmax.f32 %v469_v16, 0.0 }
 0x169   : > { %v488_v19 = vadd.f32 %v478_v18, %v477_v17 }
 0x16b   : > { %489 = vadd.xlane.f32.xlu2 %v488_v19 }
 0x1c6   : > { %v481_v25 = vpop.xlane.xlu2 %480 }
 0x1c7   : > { %v491_v33 = vmul.f32 0.00390625, %v481_v25 }
 0x1c9   : > { %v501_v38 = vperm.slane %v491_v33, %v500_v27 }
 0x1ce   : > { %v484_v26 = vpop.xlane.xlu0 %483 }
 0x1cf   : > { %v492_v30 = vmul.f32 0.00390625, %v484_v26 }
 0x1d1   : > { %v503_v34 = vperm.slane %v492_v30, %v502_v29 }
 0x1d3   : > { %v505_v40 = vsel %vm504_vm3, %v503_v34, %v501_v38 }
 0x1d6   : > { %v487_v28 = vpop.xlane.xlu1 %486 }
 0x1d7   : > { %v493_v32 = vmul.f32 0.00390625, %v487_v28 }
 0x1d9   : > { %v507_v36 = vperm.slane %v493_v32, %v506_v31 }
 0x1db   : > { %v509_v42 = vsel %vm508_vm4, %v507_v36, %v505_v40 }
 0x1de   : > { %v490_v37 = vpop.xlane.xlu2 %489 }
 0x1df   : > { %v494_v39 = vmul.f32 0.00390625, %v490_v37 }
 0x1e1   : > { %v511_v41 = vperm.slane %v494_v39, %v510_v35 }
 0x1e3   : > { %v513_v43 = vsel %vm512_vm5, %v511_v41, %v509_v42 }
 0x1e4   : > { %516 = vst.msk [vmem:[#allocation2] sm:$0x1] %vm515_vm6, %v513_v43 }
 0x1eb   : > { %v517_v44 = vld [vmem:[#allocation2] sm:$0x1] }
 0x1ec   : > { %670 = vmatmul.msk.f32.vlgmr.msrb.gmra.mxu0 %vm426_vm2, %v517_v44 }
 0x269   : > { %v543_v46 = vpop.f32.mrf.mxu0 }
 0x26a   : > { %v544_v47 = vadd.f32 %v543_v46, %v522_v45 }
 0x26c   : > { %v547_v48 = vsel %vm546_vm7, %v544_v47, -inf }
 0x26d   : > { %548 = vmax.xlane.f32.xlu2 %v547_v48 }
 0x2e0   : > { %v549_v49 = vpop.xlane.xlu2 %548 }
 0x2e1   : > { %v550_v50 = vsub.f32 %v544_v47, %v549_v49 }
 0x2e3   : > { %v551_v51 = vmul.f32 1.442695, %v550_v50 }
 0x2e5   : > { %721 = vpow2.f32 %v551_v51 }
 0x2eb   : > { %v722_v52 = vpop.eup %721 }
 0x2ec   : > { %v553_v53 = vsel %vm546_vm7, %v722_v52, 0.0 }
 0x2ed   : > { %554 = vadd.xlane.f32.xlu0 %v553_v53 }
 0x360   : > { %v555_v54 = vpop.xlane.xlu0 %554 }
 0x361   : > { %723 = vrcp.f32 %v555_v54  ;;  %v567_v58 = vand.u32 2147483648, %v555_v54  ;;  %v565_v60 = vand.u32 2147483647, %v555_v54  ;;  %vm561_vm9 = vweird.f32 %v555_v54 }
 0x363   : > { %v568_v62 = vor.u32 1.1754944e-38, %v567_v58  ;;  %vm566_vm11 = vcmp.eq.f32.partialorder %v565_v60, 8.507059e+37 }
 0x367   : > { %v724_v55 = vpop.eup %723 }
 0x368   : > { %v557_v56 = vmul.f32 %v724_v55, %v555_v54  ;;  %vm562_vm8 = vweird.f32 %v724_v55 }
 0x369   : > { %vm563_vm10 = vmor %vm561_vm9, %vm562_vm8 }
 0x36a   : > { %v558_v57 = vsub.f32 1.0, %v557_v56 }
 0x36c   : > { %v559_v59 = vmul.f32 %v724_v55, %v558_v57 }
 0x36e   : > { %v560_v61 = vadd.f32 %v724_v55, %v559_v59 }
 0x370   : > { %v564_v63 = vsel %vm563_vm10, %v724_v55, %v560_v61 }
 0x371   : > { %v569_v0 = vsel %vm566_vm11, %v568_v62, %v564_v63 }
 0x372   : > { %v570_v1 = vmul.f32 %v722_v52, %v569_v0 }
 0x374   : > { %571 = vst.msk [vmem:[%s270_s14] sm:$0x1] %vm546_vm7, %v570_v1 }
 0x375   : > { %752 = shalt.err (!%p749_p3)
}
 0x376   : > { %678 = dma.vmem_to_hbm [thread:$0]  (%p868_p5), %s584_s15, 16, %s586_s16, %s573_s17  }
 0x377 PF: > { %p684_p4 = scmp.ge.s32.totalorder %s787_s27, 2  ;;  %s597_s29 = sand.u32 1, %s775_s24  }
 0x378   : > { %s598_s8 = scalar_lea.sflag [#allocation4], %s597_s29 }
 0x379   : > { %p681_p7 = pnand %p684_p4, %p872_p6 }
 0x37b   : > { %p682_p8 = pneg %p681_p7 }
 0x37d   : > { %770 = dma.done.wait (%p682_p8), %s598_s8, 16  }
 0x37e   : > { %772 = vsyncadd (%p682_p8), %s598_s8, 4294967280  ;;  %p17_p9 = scmp.ge.s32.totalorder %s855_s30, 4   ;;  %s984_s24 = smov %s779_s25 }
 0x37f   : > { %s985_s25 = smov %s783_s26  ;;  %s986_s26 = smov %s866_s10 }
 0x380   : > { %s987_s27 = smov %s855_s30  ;;  %19 = sbr.rel (!%p17_p9) target bundleno = 3 (0x3), region = 83 }
 0x385   :  { %603 = vsyncpa [#allocation4], 1 }
 0x386   :  { %605 = vsyncpa [#allocation4 + $0x1], 1 }

</bundles_post_ra>
